<compile_context>
chip_gen: v7x
topology: tpu7x:2x2x1
jax: 0.10.0
libtpu: 0.0.40
codegen_flags: <defaults>
</compile_context>

<pallas_src>
import functools

import jax
import jax.numpy as jnp
from jax import lax
from jax.experimental import pallas as pl
from jax.experimental.pallas import tpu as pltpu


def conv2d_relu_kernel(x_ref, w_ref, b_ref, o_ref, *, ker_sz, th, w_dim):
    """One (batch, H-tile) per grid step, computed in lane-dense (Cout, TH*W) form.

    x_ref: (1, 1, Cin, (TH + ker-1)*W + ker-1)  flattened H-tile slab: halo rows
           included, `pad` zero elements on each flat end (VMEM)
    w_ref: (Cout, ker*ker*Cin)                   im2col weight matrix (VMEM)
    b_ref: (Cout, 1)                             bias column (VMEM)
    o_ref: (1, Cout, TH*W)                       output tile, lane dim = TH*W (VMEM)
    """
    cin = x_ref.shape[2]
    hw = th * w_dim
    pad = (ker_sz - 1) // 2

    # Column index of every output position (for masking the W-halo taps).
    col = lax.broadcasted_iota(jnp.int32, (cin, hw), 1) % w_dim

    # Build the (ker*ker*Cin, TH*W) im2col matrix.  Because the slab is flattened
    # (rows of width W back-to-back) and end-padded by `pad` zeros, every tap
    # (kh, kw) is a contiguous lane slice starting at kh*W + kw — no reshape,
    # no strided window.  Only the columns that wrapped across a row boundary
    # (the would-be W padding) need to be zeroed.
    patches = []
    for kh in range(ker_sz):
        for kw in range(ker_sz):
            s = kh * w_dim + kw
            p = x_ref[0, 0, :, pl.ds(s, hw)]          # (Cin, TH*W)
            d = kw - pad
            if d != 0:
                valid = jnp.logical_and(col + d >= 0, col + d < w_dim)
                p = jnp.where(valid, p, 0.0)
            patches.append(p)
    im2col = jnp.concatenate(patches, axis=0)          # (ker*ker*Cin, TH*W)

    # Single K = ker*ker*Cin MXU contraction; acc (Cout, TH*W) = dense vregs.
    acc = jnp.dot(w_ref[...], im2col, preferred_element_type=jnp.float32)
    acc = acc + b_ref[...]              # (Cout, 1) broadcast over lanes
    acc = jnp.maximum(acc, 0.0)         # act_fn = ReLU
    o_ref[0] = acc.astype(o_ref.dtype)


def _pick_tile_rows(H, W, pad, cin, itemsize, slab_budget_bytes=4 << 20):
    """Output rows per grid step.  Full image if its slab fits a small VMEM
    budget; otherwise the largest divisor of H whose slab fits and whose output
    lane dim (TH*W) stays a multiple of 128 (unmasked stores, v7x VMEM-safe)."""
    if (H + 2 * pad) * W * cin * itemsize <= slab_budget_bytes:
        return H
    for th in range(H - 1, 0, -1):
        if H % th == 0 and (th * W) % 128 == 0 and \
                (th + 2 * pad) * W * cin * itemsize <= slab_budget_bytes:
            return th
    return H  # fallback: full image (may need a larger VMEM limit)


def conv2d_forward(x_nchw, weight_oihw, bias, *, ker_sz=3, strd=1, tile_rows=None):
    assert strd == 1, "module config uses stride 1"
    assert ker_sz % 2 == 1
    N, Cin, H, W = x_nchw.shape
    Cout, Cin_w, KH, KW = weight_oihw.shape
    assert Cin_w == Cin and KH == ker_sz and KW == ker_sz
    pad = (ker_sz - 1) // 2

    itemsize = jnp.dtype(x_nchw.dtype).itemsize
    th = tile_rows if tile_rows is not None else _pick_tile_rows(H, W, pad, Cin, itemsize)
    assert H % th == 0, "tile_rows must divide H"
    num_t = H // th

    # --- input prep (stays NCHW; no layout transposes) ---
    # Pad H by `pad` rows, cut overlapping TH-row slabs (halo rows included),
    # flatten each slab's spatial dims, and add `pad` zero elements at each flat
    # end so every tap becomes a contiguous lane slice inside the kernel.
    xh = jnp.pad(x_nchw, ((0, 0), (0, 0), (pad, pad), (0, 0)))
    slabs = jnp.stack(
        [xh[:, :, t * th: t * th + th + 2 * pad, :] for t in range(num_t)], axis=1)
    slabs = slabs.reshape(N, num_t, Cin, (th + 2 * pad) * W)
    slabs = jnp.pad(slabs, ((0, 0), (0, 0), (0, 0), (pad, pad)))
    slab_len = (th + 2 * pad) * W + 2 * pad

    # im2col weight matrix (Cout, ker*ker*Cin); bias as a lane-broadcast column.
    w_mat = jnp.transpose(weight_oihw, (0, 2, 3, 1)).reshape(
        Cout, ker_sz * ker_sz * Cin).astype(jnp.float32)
    b_col = bias.reshape(Cout, 1).astype(jnp.float32)

    out_flat = pl.pallas_call(
        functools.partial(conv2d_relu_kernel, ker_sz=ker_sz, th=th, w_dim=W),
        out_shape=jax.ShapeDtypeStruct((N, Cout, H * W), x_nchw.dtype),
        grid=(N, num_t),
        in_specs=[
            pl.BlockSpec((1, 1, Cin, slab_len), lambda n, t: (n, t, 0, 0)),
            pl.BlockSpec((Cout, ker_sz * ker_sz * Cin), lambda n, t: (0, 0)),
            pl.BlockSpec((Cout, 1), lambda n, t: (0, 0)),
        ],
        out_specs=pl.BlockSpec((1, Cout, th * W), lambda n, t: (n, 0, t)),
        compiler_params=pltpu.CompilerParams(
            dimension_semantics=("parallel", "parallel"),
            vmem_limit_bytes=48 * 1024 * 1024),
    )(slabs, w_mat, b_col)

    # (N, Cout, H*W) is already NCHW-contiguous: this reshape is free.
    return out_flat.reshape(N, Cout, H, W)


def init_params(key, n_in, n_out, ker_sz=3):
    """xavier_uniform_ on weight (OIHW), zero bias — same as the module init."""
    fan_in = n_in * ker_sz * ker_sz
    fan_out = n_out * ker_sz * ker_sz
    bound = (6.0 / (fan_in + fan_out)) ** 0.5
    w = jax.random.uniform(key, (n_out, n_in, ker_sz, ker_sz),
                           minval=-bound, maxval=bound, dtype=jnp.float32)
    b = jnp.zeros((n_out,), jnp.float32)
    return w, b


if __name__ == "__main__":
    key = jax.random.PRNGKey(0)
    k_x, k_w = jax.random.split(key)

    N, Cin, H, W = 2, 4, 16, 16
    Cout = 8

    x = jax.random.normal(k_x, (N, Cin, H, W), dtype=jnp.float32)
    weight, bias = init_params(k_w, Cin, Cout, ker_sz=3)

    # Reference: XLA conv (NCHW / OIHW, padding=1) + bias + ReLU.
    ref = lax.conv_general_dilated(
        x, weight, window_strides=(1, 1), padding=((1, 1), (1, 1)),
        dimension_numbers=("NCHW", "OIHW", "NCHW"))
    ref = jnp.maximum(ref + bias[None, :, None, None], 0.0)

    # Default path: full image per grid step (grid = (N, 1)).
    out = jax.block_until_ready(conv2d_forward(x, weight, bias, ker_sz=3, strd=1))
    assert out.shape == (N, Cout, H, W)
    assert jnp.allclose(out, ref, atol=1e-5, rtol=1e-5)

    # Forced H-tiling path (grid = (N, 2)) — exercises the parallel H-tile grid.
    out_tiled = jax.block_until_ready(
        conv2d_forward(x, weight, bias, ker_sz=3, strd=1, tile_rows=8))
    assert jnp.allclose(out_tiled, ref, atol=1e-5, rtol=1e-5)

    print("KERNEL_OK")
</pallas_src>

<mosaic_0001>
module attributes {stable_mosaic.version = 11 : i64} {
  func.func @conv2d_relu_kernel(%arg0: i32, %arg1: i32, %arg2: memref<1x1x4x290xf32, #tpu.memory_space<vmem>>, %arg3: memref<8x36xf32, #tpu.memory_space<vmem>>, %arg4: memref<8x1xf32, #tpu.memory_space<vmem>>, %arg5: memref<1x8x256xf32, #tpu.memory_space<vmem>>) attributes {dimension_semantics = [#tpu.dimension_semantics<parallel>, #tpu.dimension_semantics<parallel>], iteration_bounds = array<i64: 2, 1>, scalar_prefetch = 0 : i64, scratch_operands = 0 : i64, tpu.core_type = #tpu.core_type<tc>, window_params = [{transform_indices = @transform_0, window_bounds = array<i64: 1, 1, 4, 290>}, {pipeline_mode = #tpu.pipeline_mode<synchronous>, transform_indices = @transform_1, window_bounds = array<i64: 8, 36>}, {pipeline_mode = #tpu.pipeline_mode<synchronous>, transform_indices = @transform_2, window_bounds = array<i64: 8, 1>}, {transform_indices = @transform_3, window_bounds = array<i64: 1, 8, 256>}]} {
    %0 = tpu.iota {dimensions = array<i32: 1>} : vector<4x256xi32>
    %c16_i32 = arith.constant 16 : i32
    %c0_i32 = arith.constant 0 : i32
    %1 = arith.cmpi eq, %c16_i32, %c0_i32 : i32
    %c1_i32 = arith.constant 1 : i32
    %2 = arith.select %1, %c1_i32, %c16_i32 : i32
    %3 = vector.broadcast %2 : i32 to vector<4x256xi32>
    %4 = arith.remsi %0, %3 : vector<4x256xi32>
    %c0_i32_0 = arith.constant 0 : i32
    %5 = vector.broadcast %c0_i32_0 : i32 to vector<4x256xi32>
    %6 = arith.cmpi ne, %4, %5 : vector<4x256xi32>
    %c0_i32_1 = arith.constant 0 : i32
    %7 = vector.broadcast %c0_i32_1 : i32 to vector<4x256xi32>
    %8 = arith.cmpi slt, %4, %7 : vector<4x256xi32>
    %c0_i32_2 = arith.constant 0 : i32
    %9 = arith.cmpi slt, %2, %c0_i32_2 : i32
    %10 = vector.broadcast %9 : i1 to vector<4x256xi1>
    %11 = vector.broadcast %10 : vector<4x256xi1> to vector<4x256xi1>
    %12 = arith.xori %8, %11 : vector<4x256xi1>
    %13 = arith.andi %12, %6 : vector<4x256xi1>
    %14 = vector.broadcast %2 : i32 to vector<4x256xi32>
    %15 = arith.addi %4, %14 : vector<4x256xi32>
    %16 = arith.select %13, %15, %4 : vector<4x256xi1>, vector<4x256xi32>
    %c0 = arith.constant 0 : index
    %c0_3 = arith.constant 0 : index
    %c0_4 = arith.constant 0 : index
    %c0_5 = arith.constant 0 : index
    %17 = vector.load %arg2[%c0, %c0_3, %c0_4, %c0_5] : memref<1x1x4x290xf32, #tpu.memory_space<vmem>>, vector<1x1x4x256xf32>
    %18 = vector.shape_cast %17 : vector<1x1x4x256xf32> to vector<4x256xf32>
    %c-1_i32 = arith.constant -1 : i32
    %19 = vector.broadcast %c-1_i32 : i32 to vector<4x256xi32>
    %20 = arith.addi %16, %19 : vector<4x256xi32>
    %c0_i32_6 = arith.constant 0 : i32
    %21 = vector.broadcast %c0_i32_6 : i32 to vector<4x256xi32>
    %22 = arith.cmpi sge, %20, %21 : vector<4x256xi32>
    %c-1_i32_7 = arith.constant -1 : i32
    %23 = vector.broadcast %c-1_i32_7 : i32 to vector<4x256xi32>
    %24 = arith.addi %16, %23 : vector<4x256xi32>
    %c16_i32_8 = arith.constant 16 : i32
    %25 = vector.broadcast %c16_i32_8 : i32 to vector<4x256xi32>
    %26 = arith.cmpi slt, %24, %25 : vector<4x256xi32>
    %27 = arith.andi %22, %26 : vector<4x256xi1>
    %cst = arith.constant 0.000000e+00 : f32
    %28 = vector.broadcast %cst : f32 to vector<4x256xf32>
    %29 = arith.select %27, %18, %28 : vector<4x256xi1>, vector<4x256xf32>
    %c0_9 = arith.constant 0 : index
    %c0_10 = arith.constant 0 : index
    %c0_11 = arith.constant 0 : index
    %c1 = arith.constant 1 : index
    %30 = vector.load %arg2[%c0_9, %c0_10, %c0_11, %c1] : memref<1x1x4x290xf32, #tpu.memory_space<vmem>>, vector<1x1x4x256xf32>
    %31 = vector.shape_cast %30 : vector<1x1x4x256xf32> to vector<4x256xf32>
    %c0_12 = arith.constant 0 : index
    %c0_13 = arith.constant 0 : index
    %c0_14 = arith.constant 0 : index
    %c2 = arith.constant 2 : index
    %32 = vector.load %arg2[%c0_12, %c0_13, %c0_14, %c2] : memref<1x1x4x290xf32, #tpu.memory_space<vmem>>, vector<1x1x4x256xf32>
    %33 = vector.shape_cast %32 : vector<1x1x4x256xf32> to vector<4x256xf32>
    %c1_i32_15 = arith.constant 1 : i32
    %34 = vector.broadcast %c1_i32_15 : i32 to vector<4x256xi32>
    %35 = arith.addi %16, %34 : vector<4x256xi32>
    %c0_i32_16 = arith.constant 0 : i32
    %36 = vector.broadcast %c0_i32_16 : i32 to vector<4x256xi32>
    %37 = arith.cmpi sge, %35, %36 : vector<4x256xi32>
    %c1_i32_17 = arith.constant 1 : i32
    %38 = vector.broadcast %c1_i32_17 : i32 to vector<4x256xi32>
    %39 = arith.addi %16, %38 : vector<4x256xi32>
    %c16_i32_18 = arith.constant 16 : i32
    %40 = vector.broadcast %c16_i32_18 : i32 to vector<4x256xi32>
    %41 = arith.cmpi slt, %39, %40 : vector<4x256xi32>
    %42 = arith.andi %37, %41 : vector<4x256xi1>
    %cst_19 = arith.constant 0.000000e+00 : f32
    %43 = vector.broadcast %cst_19 : f32 to vector<4x256xf32>
    %44 = arith.select %42, %33, %43 : vector<4x256xi1>, vector<4x256xf32>
    %c0_20 = arith.constant 0 : index
    %c0_21 = arith.constant 0 : index
    %c0_22 = arith.constant 0 : index
    %c16 = arith.constant 16 : index
    %45 = vector.load %arg2[%c0_20, %c0_21, %c0_22, %c16] : memref<1x1x4x290xf32, #tpu.memory_space<vmem>>, vector<1x1x4x256xf32>
    %46 = vector.shape_cast %45 : vector<1x1x4x256xf32> to vector<4x256xf32>
    %c-1_i32_23 = arith.constant -1 : i32
    %47 = vector.broadcast %c-1_i32_23 : i32 to vector<4x256xi32>
    %48 = arith.addi %16, %47 : vector<4x256xi32>
    %c0_i32_24 = arith.constant 0 : i32
    %49 = vector.broadcast %c0_i32_24 : i32 to vector<4x256xi32>
    %50 = arith.cmpi sge, %48, %49 : vector<4x256xi32>
    %c-1_i32_25 = arith.constant -1 : i32
    %51 = vector.broadcast %c-1_i32_25 : i32 to vector<4x256xi32>
    %52 = arith.addi %16, %51 : vector<4x256xi32>
    %c16_i32_26 = arith.constant 16 : i32
    %53 = vector.broadcast %c16_i32_26 : i32 to vector<4x256xi32>
    %54 = arith.cmpi slt, %52, %53 : vector<4x256xi32>
    %55 = arith.andi %50, %54 : vector<4x256xi1>
    %cst_27 = arith.constant 0.000000e+00 : f32
    %56 = vector.broadcast %cst_27 : f32 to vector<4x256xf32>
    %57 = arith.select %55, %46, %56 : vector<4x256xi1>, vector<4x256xf32>
    %c0_28 = arith.constant 0 : index
    %c0_29 = arith.constant 0 : index
    %c0_30 = arith.constant 0 : index
    %c17 = arith.constant 17 : index
    %58 = vector.load %arg2[%c0_28, %c0_29, %c0_30, %c17] : memref<1x1x4x290xf32, #tpu.memory_space<vmem>>, vector<1x1x4x256xf32>
    %59 = vector.shape_cast %58 : vector<1x1x4x256xf32> to vector<4x256xf32>
    %c0_31 = arith.constant 0 : index
    %c0_32 = arith.constant 0 : index
    %c0_33 = arith.constant 0 : index
    %c18 = arith.constant 18 : index
    %60 = vector.load %arg2[%c0_31, %c0_32, %c0_33, %c18] : memref<1x1x4x290xf32, #tpu.memory_space<vmem>>, vector<1x1x4x256xf32>
    %61 = vector.shape_cast %60 : vector<1x1x4x256xf32> to vector<4x256xf32>
    %c1_i32_34 = arith.constant 1 : i32
    %62 = vector.broadcast %c1_i32_34 : i32 to vector<4x256xi32>
    %63 = arith.addi %16, %62 : vector<4x256xi32>
    %c0_i32_35 = arith.constant 0 : i32
    %64 = vector.broadcast %c0_i32_35 : i32 to vector<4x256xi32>
    %65 = arith.cmpi sge, %63, %64 : vector<4x256xi32>
    %c1_i32_36 = arith.constant 1 : i32
    %66 = vector.broadcast %c1_i32_36 : i32 to vector<4x256xi32>
    %67 = arith.addi %16, %66 : vector<4x256xi32>
    %c16_i32_37 = arith.constant 16 : i32
    %68 = vector.broadcast %c16_i32_37 : i32 to vector<4x256xi32>
    %69 = arith.cmpi slt, %67, %68 : vector<4x256xi32>
    %70 = arith.andi %65, %69 : vector<4x256xi1>
    %cst_38 = arith.constant 0.000000e+00 : f32
    %71 = vector.broadcast %cst_38 : f32 to vector<4x256xf32>
    %72 = arith.select %70, %61, %71 : vector<4x256xi1>, vector<4x256xf32>
    %c0_39 = arith.constant 0 : index
    %c0_40 = arith.constant 0 : index
    %c0_41 = arith.constant 0 : index
    %c32 = arith.constant 32 : index
    %73 = vector.load %arg2[%c0_39, %c0_40, %c0_41, %c32] : memref<1x1x4x290xf32, #tpu.memory_space<vmem>>, vector<1x1x4x256xf32>
    %74 = vector.shape_cast %73 : vector<1x1x4x256xf32> to vector<4x256xf32>
    %c-1_i32_42 = arith.constant -1 : i32
    %75 = vector.broadcast %c-1_i32_42 : i32 to vector<4x256xi32>
    %76 = arith.addi %16, %75 : vector<4x256xi32>
    %c0_i32_43 = arith.constant 0 : i32
    %77 = vector.broadcast %c0_i32_43 : i32 to vector<4x256xi32>
    %78 = arith.cmpi sge, %76, %77 : vector<4x256xi32>
    %c-1_i32_44 = arith.constant -1 : i32
    %79 = vector.broadcast %c-1_i32_44 : i32 to vector<4x256xi32>
    %80 = arith.addi %16, %79 : vector<4x256xi32>
    %c16_i32_45 = arith.constant 16 : i32
    %81 = vector.broadcast %c16_i32_45 : i32 to vector<4x256xi32>
    %82 = arith.cmpi slt, %80, %81 : vector<4x256xi32>
    %83 = arith.andi %78, %82 : vector<4x256xi1>
    %cst_46 = arith.constant 0.000000e+00 : f32
    %84 = vector.broadcast %cst_46 : f32 to vector<4x256xf32>
    %85 = arith.select %83, %74, %84 : vector<4x256xi1>, vector<4x256xf32>
    %c0_47 = arith.constant 0 : index
    %c0_48 = arith.constant 0 : index
    %c0_49 = arith.constant 0 : index
    %c33 = arith.constant 33 : index
    %86 = vector.load %arg2[%c0_47, %c0_48, %c0_49, %c33] : memref<1x1x4x290xf32, #tpu.memory_space<vmem>>, vector<1x1x4x256xf32>
    %87 = vector.shape_cast %86 : vector<1x1x4x256xf32> to vector<4x256xf32>
    %c0_50 = arith.constant 0 : index
    %c0_51 = arith.constant 0 : index
    %c0_52 = arith.constant 0 : index
    %c34 = arith.constant 34 : index
    %88 = vector.load %arg2[%c0_50, %c0_51, %c0_52, %c34] : memref<1x1x4x290xf32, #tpu.memory_space<vmem>>, vector<1x1x4x256xf32>
    %89 = vector.shape_cast %88 : vector<1x1x4x256xf32> to vector<4x256xf32>
    %c1_i32_53 = arith.constant 1 : i32
    %90 = vector.broadcast %c1_i32_53 : i32 to vector<4x256xi32>
    %91 = arith.addi %16, %90 : vector<4x256xi32>
    %c0_i32_54 = arith.constant 0 : i32
    %92 = vector.broadcast %c0_i32_54 : i32 to vector<4x256xi32>
    %93 = arith.cmpi sge, %91, %92 : vector<4x256xi32>
    %c1_i32_55 = arith.constant 1 : i32
    %94 = vector.broadcast %c1_i32_55 : i32 to vector<4x256xi32>
    %95 = arith.addi %16, %94 : vector<4x256xi32>
    %c16_i32_56 = arith.constant 16 : i32
    %96 = vector.broadcast %c16_i32_56 : i32 to vector<4x256xi32>
    %97 = arith.cmpi slt, %95, %96 : vector<4x256xi32>
    %98 = arith.andi %93, %97 : vector<4x256xi1>
    %cst_57 = arith.constant 0.000000e+00 : f32
    %99 = vector.broadcast %cst_57 : f32 to vector<4x256xf32>
    %100 = arith.select %98, %89, %99 : vector<4x256xi1>, vector<4x256xf32>
    %101 = tpu.concatenate %29, %31, %44, %57, %59, %72, %85, %87, %100 in 0 : vector<4x256xf32>, vector<4x256xf32>, vector<4x256xf32>, vector<4x256xf32>, vector<4x256xf32>, vector<4x256xf32>, vector<4x256xf32>, vector<4x256xf32>, vector<4x256xf32> -> vector<36x256xf32>
    %c0_58 = arith.constant 0 : index
    %c0_59 = arith.constant 0 : index
    %102 = vector.load %arg3[%c0_58, %c0_59] : memref<8x36xf32, #tpu.memory_space<vmem>>, vector<8x36xf32>
    %cst_60 = arith.constant dense<0.000000e+00> : vector<8x256xf32>
    %103 = tpu.matmul %102, %101, %cst_60 {dimension_numbers = #tpu.dot_dimension_numbers<[1], [0], [0], [1], [0, 0, 1, 1], [], []>} : vector<8x36xf32>, vector<36x256xf32>, vector<8x256xf32> -> vector<8x256xf32>
    %c0_61 = arith.constant 0 : index
    %c0_62 = arith.constant 0 : index
    %104 = vector.load %arg4[%c0_61, %c0_62] : memref<8x1xf32, #tpu.memory_space<vmem>>, vector<8x1xf32>
    %105 = vector.broadcast %104 : vector<8x1xf32> to vector<8x256xf32>
    %106 = arith.addf %103, %105 : vector<8x256xf32>
    %cst_63 = arith.constant 0.000000e+00 : f32
    %107 = vector.broadcast %cst_63 : f32 to vector<8x256xf32>
    %108 = arith.maximumf %106, %107 : vector<8x256xf32>
    %c0_64 = arith.constant 0 : index
    %c0_65 = arith.constant 0 : index
    %c0_66 = arith.constant 0 : index
    %109 = vector.load %arg5[%c0_64, %c0_65, %c0_66] : memref<1x8x256xf32, #tpu.memory_space<vmem>>, vector<1x8x256xf32>
    %110 = vector.shape_cast %109 : vector<1x8x256xf32> to vector<8x256xf32>
    %111 = vector.shape_cast %108 : vector<8x256xf32> to vector<1x8x256xf32>
    tpu.vector_store %arg5[%c0_64, %c0_65, %c0_66], %111 {strides = array<i32>} : memref<1x8x256xf32, #tpu.memory_space<vmem>>, vector<1x8x256xf32>,
    return
  }
  func.func @transform_0(%arg0: i32, %arg1: i32) -> (i32, i32, i32, i32) {
    %c0_i32 = arith.constant 0 : i32
    %c0_i32_0 = arith.constant 0 : i32
    %c0_i32_1 = arith.constant 0 : i32
    return %arg0, %arg1, %c0_i32, %c0_i32_0 : i32, i32, i32, i32
  }
  func.func @transform_1(%arg0: i32, %arg1: i32) -> (i32, i32) {
    %c0_i32 = arith.constant 0 : i32
    %c0_i32_0 = arith.constant 0 : i32
    %c0_i32_1 = arith.constant 0 : i32
    return %c0_i32, %c0_i32_0 : i32, i32
  }
  func.func @transform_2(%arg0: i32, %arg1: i32) -> (i32, i32) {
    %c0_i32 = arith.constant 0 : i32
    %c0_i32_0 = arith.constant 0 : i32
    %c0_i32_1 = arith.constant 0 : i32
    return %c0_i32, %c0_i32_0 : i32, i32
  }
  func.func @transform_3(%arg0: i32, %arg1: i32) -> (i32, i32, i32) {
    %c0_i32 = arith.constant 0 : i32
    %c0_i32_0 = arith.constant 0 : i32
    return %arg0, %c0_i32, %arg1 : i32, i32, i32
  }
}

</mosaic_0001>

<bundles_post_ra>
// kernel: tpu_custom_call.1
= control target key start
LH: loop header
LB: loop body
LE: loop exit
PB: predicated region body
PF: predicated region fallthrough
CT: control target
= control target key end

     0   :  { %8 = vsyncpa [#allocation3], 0  ;;  %s1108_s0 = inlined_call_operand.hbm [shape: f32[2,1,4,290], index: 0, kind: input, shape index: {}]   ;;  %s1109_s1 = inlined_call_operand.vmem [shape: f32[8,36], index: 1, kind: input, shape index: {}]   ;;  %s1110_s2 = inlined_call_operand.vmem [shape: f32[8,1], index: 2, kind: input, shape index: {}]   ;;  %s1111_s3 = inlined_call_operand.hbm [shape: f32[2,8,256], index: 3, kind: output, shape index: {}]  }
   0x1   :  { %10 = vsyncpa [#allocation3 + $0x1], 0 }
   0x2   :  { %11 = vsyncpa [#allocation4], 0 }
   0x3   :  { %13 = vsyncpa [#allocation4 + $0x1], 0  ;;  %s856_s12 = smov 0   ;;  %s858_s13 = smov 0  }
   0x4   :  { %s860_s14 = smov 0   ;;  %s862_s15 = smov 0  }
   0x5   :  { %s864_s16 = smov 0   ;;  %s866_s17 = smov 0  }
   0x6 LB: > { %s571_s18 = sadd.s32 4294967295, %s822_s17   ;;  %s572_s19 = sadd.s32 4294967294, %s822_s17   ;;  %s822_s17 = sphi %s866_s17, %s19_s17   ;;  %s818_s16 = sphi %s864_s16, %s1126_s16   ;;  %s814_s15 = sphi %s862_s15, %s1125_s15   ;;  %s810_s14 = sphi %s860_s14, %s1124_s14   ;;  %s806_s13 = sphi %s858_s13, %s1123_s13   ;;  %s802_s12 = sphi %s856_s12, %s1122_s12  }
   0x7   : > { %s31_s20 = sadd.s32 1, %s818_s16  ;;  %s40_s21 = sadd.s32 1, %s810_s14 }
   0x8   : > { %p33_p0 = scmp.ge.s32.totalorder %s31_s20, 2  ;;  %p47_p1 = scmp.ne.s32.totalorder %s810_s14, %s806_s13 }
   0x9   : > { %p48_p2 = scmp.eq.s32.totalorder %s822_s17, 0  ;;  %p53_p3 = scmp.ne.s32.totalorder %s806_s13, %s802_s12 }
   0xa   : > { %s1128_s20 = smov (%p33_p0, %s31_s20), 0  ;;  %p54_p5 = scmp.eq.s32.totalorder %s571_s18, 0 }
   0xb   : > { %p897_p4 = por %p48_p2, %p47_p1  ;;  %s35_s23 = ssub.s32 %s818_s16, %s1128_s20 }
   0xc   : > { %p121_p6 = scmp.eq.s32.totalorder %s571_s18, 1  ;;  %p38_p7 = scmp.eq.s32.totalorder %s35_s23, 0 }
   0xd   : > { %p903_p8 = por %p54_p5, %p53_p3  ;;  %p127_p10 = scmp.eq.s32.totalorder %s572_s19, 1 }
   0xe   : > { %p907_p9 = por %p121_p6, %p47_p1  ;;  %p610_p13 = scmp.lt.s32.totalorder %s822_s17, 2 }
   0xf   : > { %s912_s26 = scalar_select %p38_p7, %s810_s14, %s40_s21  }
  0x10   : > { %s1115_s25 = scalar_select %p907_p9, 1, 0 }
  0x11   : > { %p914_p11 = por %p127_p10, %p53_p3  ;;  %s153_s28 = sand.u32 1, %s810_s14  }
  0x12   : > { %s595_s29 = smul.u32 12, %s153_s28  ;;  %p924_p0 = pnand %p610_p13, %p897_p4 }
  0x13   : > { %s1116_s27 = scalar_select %p914_p11, 1, 0 }
  0x14   : > { %s596_s30 = smul.u32 192, %s818_s16  ;;  %s157_s8 = scalar_lea.vmem [#allocation2], %s595_s29 }
  0x15   : > { %s167_s9 = sshll.u32 %s157_s8, 4  ;;  %s154_s10 = scalar_lea.sflag [#allocation3], %s153_s28  ;;  %s934_s9 = int_to_ptr.vmem [resolvable:$true] %s167_s9 }
  0x16   : > { %s932_s7 = scalar_lea.hbm %s1108_s0, %s596_s30  ;;  %p712_p3 = pneg %p924_p0 }
  0x17   : > { %s710_s11 = scalar_lea.hbm %s932_s7, 192  ;;  %s715_s21 = scalar_lea.hbm %s1108_s0, 384 }
  0x18   : > { %p711_p2 = scmp.ne.s32.totalorder %s932_s7, %s710_s11  ;;  %p716_p6 = scmp.lt.u32.totalorder %s932_s7, %s1108_s0 }
  0x19   : > { %p717_p7 = scmp.lt.u32.totalorder %s715_s21, %s710_s11  ;;  %p719_p13 = scmp.lt.u32.totalorder %s710_s11, %s932_s7 }
  0x1a   : > { %p713_p4 = pnand %p712_p3, %p711_p2 }
  0x1b   : > { %p718_p10 = por %p717_p7, %p716_p6 }
  0x1c   : > { %p714_p5 = pneg %p713_p4 }
  0x1d   : > { %p720_p12 = por %p719_p13, %p718_p10 }
  0x1f   : > { %p721_p1 = pnand %p720_p12, %p714_p5 }
  0x21   : > { %724 = shalt.err (!%p721_p1)
}
  0x22   : > { %s725_s28 = scalar_lea.vmem %s934_s9, 192  ;;  %s824_s29 = smov [#allocation2]  }
  0x23   : > { %p726_p2 = scmp.ne.s32.totalorder %s934_s9, %s725_s28  ;;  %s730_s30 = sshll.u32 %s824_s29, 4  ;;  %s731_s30 = int_to_ptr.vmem [resolvable:$false] %s730_s30 }
  0x24   : > { %s732_s5 = scalar_lea.vmem %s731_s30, 384  ;;  %p733_p9 = scmp.lt.s32.totalorder %s934_s9, %s731_s30 }
  0x25   : > { %p728_p4 = pnand %p726_p2, %p712_p3  ;;  %p734_p6 = scmp.lt.s32.totalorder %s732_s5, %s725_s28 }
  0x27   : > { %p729_p11 = pneg %p728_p4  ;;  %p735_p7 = por %p734_p6, %p733_p9 }
  0x29   : > { %p736_p10 = pnand %p735_p7, %p729_p11 }
  0x2b   : > { %739 = shalt.err (!%p736_p10)
}
  0x2c   : > { %605 = dma.hbm_to_vmem [thread:$0]  (!%p924_p0), %s932_s7, 192, %s934_s9, %s154_s10  }
  0x2d   : > { %p172_p12 = scmp.lt.s32.totalorder %s822_s17, 3  ;;  %p1118_p1 = scmp.ge.s32.totalorder %s822_s17, 1 }
  0x2f   : > { %p173_p3 = pnand %p1118_p1, %p172_p12 }
  0x30   : > { %s965_s6 = sand.u32 (!%p173_p3), 1, %s806_s13  }
  0x31   : > { %176 = sbr.rel (%p173_p3) target bundleno = 439 (0x1b7), region = 32  ;;  %s179_s11 = scalar_lea.sflag (!%p173_p3), [#allocation3], %s965_s6 }
  0x32   : > { %s597_s8 = smul.u32 (!%p173_p3), 12, %s965_s6 }
  0x34   : > { %s182_s18 = scalar_lea.vmem (!%p173_p3), [#allocation2], %s597_s8 }
  0x38   : > { %793 = dma.done.wait (%p903_p8), %s179_s11, 192  }
  0x39   : > { %795 = vsyncadd (%p903_p8), %s179_s11, 4294967104  ;;  %v973_v0 = vld [vmem:[%s182_s18] sm:$0xff]  ;;  %v247_v1 = vld [vmem:[%s182_s18 + $0x8] sm:$0xf]  ;;  %s825_s4 = smov 126   ;;  %s826_s7 = smov 112   ;;  %v206_v10 = vlaneseq }
  0x3a   : > { %257 = vrot.lane.b32.xlu1 %v973_v0, %s825_s4  ;;  %270 = vrot.lane.b32.xlu0 %v973_v0, %s826_s7  ;;  %v979_v2 = vcombine.high %v973_v0, %v973_v0  ;;  %v323_v3 = vcombine.low %v247_v1, %v247_v1  ;;  %s827_s24 = smov 110   ;;  %s828_s9 = smov 127   ;;  %v322_v6 = vcombine.low %v973_v0, %v973_v0  ;;  %v832_v7 = vmov 0.0   ;;  %v379_v9 = vld [vmem:[%s1110_s2] sm:$0xff] }
  0x3b   : > { %s829_s10 = smov 96   ;;  %s830_s19 = smov 95   ;;  %459 = vmatprep.mubr.f32.mxu0 %v832_v7  ;;  %v833_v8 = vmov 0   ;;  %v207_v11 = vand.u32 127, %v206_v10  ;;  %vm276_vm0 = vcmask 916480   ;;  %vm263_vm4 = vcmask 1031168  }
  0x3c   : > { %v675_v4 = vpack.i.bf16 %v247_v1, %v979_v2  ;;  %v680_v5 = vpack.i.bf16 %v323_v3, %v973_v0  ;;  %s831_s21 = smov 111   ;;  %705 = vset.pattern.permute.xlu1 %v833_v8  ;;  %706 = vset.pattern.permute.xlu0 %v833_v8  ;;  %s834_s22 = smov 94   ;;  %vm330_vm5 = vcmask 1039360   ;;  %vm369_vm6 = vcmask 1043456  }
  0x3d   : > { %v208_v12 = vadd.s32 128, %v207_v11  ;;  %v213_v13 = vand.u32 15, %v207_v11  ;;  %vm289_vm8 = vcmask 900096   ;;  %vm302_vm9 = vcmask 785408   ;;  %s577_s5 = sshll.u32 %s965_s6, 4  ;;  %s586_s8 = sshll.u32 %s814_s15, 8 }
  0x3e   : > { %676 = vrot.lane.b32.xlu1 %v675_v4, %s825_s4  ;;  %671 = vrot.lane.b32.xlu0 %v675_v4, %s826_s7  ;;  %vm364_vm10 = vcmask 777216   ;;  %vm347_vm11 = vcmask 908288   ;;  %vm315_vm12 = vcmask 769024   ;;  %vm385_vm13 = vcmask 293888   ;;  %s204_s11 = scalar_lea.vmem [#allocation5], %s577_s5  ;;  %p1119_p9 = scmp.ne.s32.totalorder %s1115_s25, 0 }
  0x3f   : > { %v220_v14 = vand.u32 15, %v208_v12  ;;  %v995_v18 = vadd.s32 4294967295, %v213_v13  ;;  %v1001_v26 = vadd.s32 1, %v213_v13  ;;  %s487_s18 = sshll.u32 %s204_s11, 4  ;;  %s835_s15 = smov [#allocation5]   ;;  %s1061_s18 = int_to_ptr.vmem [resolvable:$true] %s487_s18 }
  0x41   : > { %v993_v17 = vadd.s32 4294967295, %v220_v14  ;;  %v997_v19 = vadd.s32 1, %v220_v14  ;;  %vm236_vm2 = vcmp.ge.s32.totalorder %v995_v18, 0  ;;  %vm252_vm7 = vcmp.lt.s32.totalorder %v1001_v26, 16 }
  0x42   : > { %686 = vrot.lane.b32.xlu1 %v675_v4, %s827_s24  ;;  %681 = vrot.lane.b32.xlu0 %v680_v5, %s828_s9  ;;  %v245_v42 = vsel %vm236_vm2, %v973_v0, 0.0 }
  0x43   : > { %vm237_vm1 = vcmp.ge.s32.totalorder %v993_v17, 0  ;;  %vm253_vm3 = vcmp.lt.s32.totalorder %v997_v19, 16 }
  0x44   : > { %v246_v36 = vsel %vm237_vm1, %v979_v2, 0.0 }
  0x46   : > { %283 = vrot.lane.b32.xlu1 %v973_v0, %s827_s24  ;;  %324 = vrot.lane.b32.xlu0 %v322_v6, %s828_s9  ;;  %s1059_s24 = scalar_lea.hbm %s1111_s3, %s586_s8  ;;  %s471_s9 = scalar_lea.sflag [#allocation4], %s965_s6 }
  0x4a   : > { %296 = vrot.lane.b32.xlu1 %v973_v0, %s829_s10  ;;  %691 = vrot.lane.b32.xlu0 %v675_v4, %s829_s10  ;;  %s740_s10 = scalar_lea.vmem %s1061_s18, 256 }
  0x4b   : > { %p741_p8 = scmp.ne.s32.totalorder %s1061_s18, %s740_s10 }
  0x4d   : > { %p742_p11 = pnand %p741_p8, %p1119_p9 }
  0x4e   : > { %701 = vrot.lane.b32.xlu1 %v680_v5, %s830_s19  ;;  %696 = vrot.lane.b32.xlu0 %v675_v4, %s831_s21 }
  0x4f   : > { %p743_p0 = pneg %p742_p11 }
  0x52   : > { %358 = vrot.lane.b32.xlu1 %v322_v6, %s830_s19  ;;  %341 = vrot.lane.b32.xlu0 %v973_v0, %s831_s21  ;;  %s744_s19 = sshll.u32 %s835_s15, 4  ;;  %s745_s19 = int_to_ptr.vmem [resolvable:$false] %s744_s19 }
  0x53   : > { %s746_s21 = scalar_lea.vmem %s745_s19, 512  ;;  %p747_p5 = scmp.lt.s32.totalorder %s1061_s18, %s745_s19 }
  0x54   : > { %p748_p13 = scmp.lt.s32.totalorder %s746_s21, %s740_s10 }
  0x56   : > { %313 = vrot.lane.b32.xlu1 %v247_v1, %s834_s22  ;;  %311 = vrot.lane.b32.xlu0 %v979_v2, %s834_s22  ;;  %p749_p2 = por %p748_p13, %p747_p5 }
  0x58   : > { %p750_p4 = pnand %p749_p2, %p743_p0 }
  0x5a   : > { %309 = vrot.lane.b32.xlu0 %v973_v0, %s834_s22  ;;  %382 = vperm.xlu1 %705, %v379_v9  }
  0xac   : > { %v258_v15 = vpop.permute.xlu1 %257  ;;  %v271_v16 = vpop.permute.xlu0 %270 }
  0xb0   : > { %v677_v20 = vpop.permute.xlu1 %676  ;;  %v672_v21 = vpop.permute.xlu0 %671 }
  0xb1   : > { %v679_v22 = vunpack.i.h.bf16 %v677_v20  ;;  %v678_v23 = vunpack.i.l.bf16 %v677_v20  ;;  %v674_v24 = vunpack.i.h.bf16 %v672_v21  ;;  %v673_v25 = vunpack.i.l.bf16 %v672_v21 }
  0xb3   : > { %v277_v27 = vsel %vm276_vm0, %v271_v16, %v673_v25  ;;  %v278_v28 = vsel %vm276_vm0, %v673_v25, %v674_v24  ;;  %v265_v29 = vsel %vm263_vm4, %v678_v23, %v679_v22  ;;  %v264_v39 = vsel %vm263_vm4, %v258_v15, %v678_v23 }
  0xb4   : > { %v687_v30 = vpop.permute.xlu1 %686  ;;  %v682_v31 = vpop.permute.xlu0 %681  ;;  %v282_v32 = vsel %vm237_vm1, %v278_v28, 0.0  ;;  %v281_v33 = vsel %vm236_vm2, %v277_v27, 0.0  ;;  %v269_v37 = vsel %vm253_vm3, %v265_v29, 0.0  ;;  %v268_v51 = vsel %vm252_vm7, %v264_v39, 0.0 }
  0xb5   : > { %v684_v34 = vunpack.i.h.bf16 %v682_v31  ;;  %v683_v35 = vunpack.i.l.bf16 %v682_v31  ;;  %v338_v38 = vrot.slane %v282_v32, 4  ;;  %v337_v40 = vrot.slane %v281_v33, 4  ;;  %v378_v31 = vld [vmem:[%s1109_s1] sm:$0xff] }
  0xb6   : > { %v689_v43 = vunpack.i.h.bf16 %v687_v30  ;;  %v688_v44 = vunpack.i.l.bf16 %v687_v30 }
  0xb7   : > { %v332_v41 = vsel %vm330_vm5, %v683_v35, %v684_v34  ;;  %v373_v48 = vsel %vm369_vm6, %v269_v37, %v338_v38  ;;  %v372_v53 = vsel %vm369_vm6, %v268_v51, %v337_v40 }
  0xb8   : > { %v284_v45 = vpop.permute.xlu1 %283  ;;  %v325_v46 = vpop.permute.xlu0 %324  ;;  %v371_v47 = vsel %vm369_vm6, %v246_v36, %v332_v41  ;;  %v291_v55 = vsel %vm289_vm8, %v688_v44, %v689_v43 }
  0xb9   : > { %v331_v49 = vsel %vm330_vm5, %v325_v46, %v683_v35  ;;  %v587_v50 = vpack.c.bf16 %v373_v48, %v371_v47  ;;  %v290_v58 = vsel %vm289_vm8, %v284_v45, %v688_v44  ;;  %v295_v61 = vsel %vm253_vm3, %v291_v55, 0.0 }
  0xba   : > { %v370_v52 = vsel %vm369_vm6, %v245_v42, %v331_v49  ;;  %v294_v62 = vsel %vm252_vm7, %v290_v58, 0.0  ;;  %v355_v6 = vrot.slane %v295_v61, 4 }
  0xbb   : > { %588 = vmatprep.subr.bf16.mxu0 %v587_v50  ;;  %v589_v54 = vpack.c.bf16 %v372_v53, %v370_v52  ;;  %v354_v11 = vrot.slane %v294_v62, 4 }
  0xbc   : > { %v297_v56 = vpop.permute.xlu1 %296  ;;  %v692_v57 = vpop.permute.xlu0 %691 }
  0xbd   : > { %v694_v59 = vunpack.i.h.bf16 %v692_v57  ;;  %v693_v60 = vunpack.i.l.bf16 %v692_v57  ;;  %590 = vmatpush1.bf16.msra.mxu0 %v589_v54 }
  0xbf   : > { %v304_v63 = vsel %vm302_vm9, %v693_v60, %v694_v59  ;;  %v303_v7 = vsel %vm302_vm9, %v297_v56, %v693_v60 }
  0xc0   : > { %v702_v0 = vpop.permute.xlu1 %701  ;;  %v697_v1 = vpop.permute.xlu0 %696  ;;  %v308_v10 = vsel %vm237_vm1, %v304_v63, 0.0  ;;  %v307_v16 = vsel %vm236_vm2, %v303_v7, 0.0 }
  0xc1   : > { %v704_v2 = vunpack.i.h.bf16 %v702_v0  ;;  %v703_v3 = vunpack.i.l.bf16 %v702_v0  ;;  %v699_v4 = vunpack.i.h.bf16 %v697_v1  ;;  %v698_v5 = vunpack.i.l.bf16 %v697_v1 }
  0xc3   : > { %v366_v8 = vsel %vm364_vm10, %v703_v3, %v704_v2  ;;  %v349_v9 = vsel %vm347_vm11, %v698_v5, %v699_v4 }
  0xc4   : > { %v359_v12 = vpop.permute.xlu1 %358  ;;  %v342_v13 = vpop.permute.xlu0 %341  ;;  %v375_v14 = vsel %vm369_vm6, %v349_v9, %v355_v6  ;;  %v377_v15 = vsel %vm369_vm6, %v308_v10, %v366_v8 }
  0xc5   : > { %v365_v20 = vsel %vm364_vm10, %v359_v12, %v703_v3  ;;  %v348_v21 = vsel %vm347_vm11, %v342_v13, %v698_v5  ;;  %v591_v22 = vpack.c.bf16 %v377_v15, %v375_v14 }
  0xc6   : > { %v376_v23 = vsel %vm369_vm6, %v307_v16, %v365_v20  ;;  %v374_v17 = vsel %vm369_vm6, %v348_v21, %v354_v11 }
  0xc7   : > { %592 = vmatprep.subr.bf16.mxu0 %v591_v22  ;;  %v593_v24 = vpack.c.bf16 %v376_v23, %v374_v17 }
  0xc8   : > { %v314_v25 = vpop.permute.xlu1 %313  ;;  %v312_v27 = vpop.permute.xlu0 %311 }
  0xc9   : > { %v317_v28 = vsel %vm315_vm12, %v312_v27, %v314_v25  ;;  %594 = vmatpush1.bf16.msra.mxu0 %v593_v24 }
  0xca   : > { %v321_v18 = vsel %vm253_vm3, %v317_v28, 0.0 }
  0xcb   : > { %578 = vmatprep.subr.msk.mxu0 %vm369_vm6, %v321_v18 }
  0xcc   : > { %v310_v29 = vpop.permute.xlu0 %309 }
  0xcd   : > { %v316_v30 = vsel %vm315_vm12, %v310_v29, %v312_v27 }
  0xce   : > { %v320_v32 = vsel %vm252_vm7, %v316_v30, 0.0 }
  0xcf   : > { %579 = vmatpush1.msk.msra.mxu0 %vm369_vm6, %v320_v32 }
  0xd0   : > { %580 = vmatmul.mubr.msk.f32.vlgmr.msra.gmra.mrb[0].mxu0 %vm385_vm13, %v378_v31 }
  0xd9   : > { %v383_v33 = vpop.permute.xlu1 %382 }
 0x1a3   : > { %v461_v19 = vpop.f32.mrb[0].mxu0 }
 0x1a4   : > { %v462_v34 = vadd.f32 %v461_v19, %v383_v33  ;;  %v463_v35 = vpop.f32.mrb[1].mxu0 }
 0x1a5   : > { %v464_v36 = vadd.f32 %v463_v35, %v383_v33 }
 0x1a6   : > { %v466_v37 = vmax.f32 %v462_v34, 0.0 }
 0x1a7   : > { %v467_v38 = vmax.f32 %v464_v36, 0.0 }
 0x1a8   : > { %468 = vst [vmem:[%s204_s11] sm:$0xff] %v466_v37 }
 0x1a9   : > { %469 = vst [vmem:[%s204_s11 + $0x8] sm:$0xff] %v467_v38 }
 0x1aa   : > { %753 = shalt.err (!%p750_p4)
}
 0x1ab   : > { %s754_s6 = scalar_lea.hbm %s1059_s24, 256  ;;  %s758_s28 = scalar_lea.hbm %s1111_s3, 512 }
 0x1ac   : > { %p755_p6 = scmp.ne.s32.totalorder %s1059_s24, %s754_s6  ;;  %p759_p12 = scmp.lt.u32.totalorder %s1059_s24, %s1111_s3 }
 0x1ad   : > { %p760_p1 = scmp.lt.u32.totalorder %s758_s28, %s754_s6  ;;  %p762_p8 = scmp.lt.u32.totalorder %s754_s6, %s1059_s24 }
 0x1ae   : > { %p756_p7 = pnand %p755_p6, %p1119_p9 }
 0x1af   : > { %p761_p3 = por %p760_p1, %p759_p12 }
 0x1b0   : > { %p757_p10 = pneg %p756_p7 }
 0x1b1   : > { %p763_p11 = por %p762_p8, %p761_p3 }
 0x1b3   : > { %p764_p0 = pnand %p763_p11, %p757_p10 }
 0x1b5   : > { %767 = shalt.err (!%p764_p0)
}
 0x1b6   : > { %600 = dma.vmem_to_hbm [thread:$0]  (%p1119_p9), %s1061_s18, 256, %s1059_s24, %s471_s9  }
 0x1b7 PF: > { %s499_s5 = sand.u32 1, %s802_s12   ;;  %p1120_p5 = scmp.ne.s32.totalorder %s1116_s27, 0 }
 0x1b8   : > { %p1121_p13 = scmp.ge.s32.totalorder %s822_s17, 2  ;;  %s500_s8 = scalar_lea.sflag [#allocation4], %s499_s5 }
 0x1ba   : > { %p607_p2 = pnand %p1121_p13, %p1120_p5 }
 0x1bc   : > { %797 = dma.done.wait (!%p607_p2), %s500_s8, 256  }
 0x1bd   : > { %799 = vsyncadd (!%p607_p2), %s500_s8, 4294967040  ;;  %s19_s17 = sadd.s32 1, %s822_s17   ;;  %s1122_s12 = smov %s806_s13 }
 0x1be   : > { %p16_p4 = scmp.ge.s32.totalorder %s19_s17, 4   ;;  %s1123_s13 = smov %s810_s14 }
 0x1bf   : > { %s1124_s14 = smov %s912_s26  ;;  %s1125_s15 = smov %s818_s16 }
 0x1c0   : > { %s1126_s16 = smov %s1128_s20  ;;  %18 = sbr.rel (!%p16_p4) target bundleno = 6 (0x6), region = 77 }
 0x1c7   :  { %505 = vsyncpa [#allocation3], 1 }
 0x1c8   :  { %507 = vsyncpa [#allocation3 + $0x1], 1 }
 0x1c9   :  { %508 = vsyncpa [#allocation4], 1 }
 0x1ca   :  { %510 = vsyncpa [#allocation4 + $0x1], 1 }

</bundles_post_ra>
